<compile_context>
chip_gen: v7x
topology: tpu7x:2x2x1
jax: 0.10.0
libtpu: 0.0.40
codegen_flags: <defaults>
</compile_context>

<pallas_src>
import numpy as np
import jax
import jax.numpy as jnp
from jax.experimental import pallas as pl
from jax.experimental.pallas import tpu as pltpu


# ---------------------------------------------------------------------------
# Parameter setup (matches PyTorch __init__ exactly).
# ---------------------------------------------------------------------------
def make_position_enc(d_model: int, seq_len: int) -> jnp.ndarray:
    """Deterministic sinusoidal table, identical to the PyTorch __init__."""
    position_enc = np.array(
        [
            [pos / np.power(10000, 2 * (j // 2) / d_model) for j in range(d_model)]
            for pos in range(seq_len)
        ]
    )
    position_enc[:, 0::2] = np.sin(position_enc[:, 0::2])
    position_enc[:, 1::2] = np.cos(position_enc[:, 1::2])
    # .unsqueeze(0).float() -> shape (1, seq_len, d_model), float32
    return jnp.asarray(position_enc[None, :, :], dtype=jnp.float32)


# ---------------------------------------------------------------------------
# Kernel.
# ---------------------------------------------------------------------------
def _pe_mul_kernel(x_ref, pe_ref, o_ref):
    # One (1, rows_per_block, LANE) tile per grid step; pure VPU multiply.
    o_ref[...] = x_ref[...] * pe_ref[...]


# Tiling constants.
_TARGET_BLOCK_BYTES = 4 << 20   # ~4 MiB blocks: fewer grid steps / DMA descriptors
_MAX_LANE = 2048                # lane-dense last dim, multiple of 128
_MIN_PALLAS_BYTES = 256 << 10   # below this, pallas_call launch overhead dominates


def _vmem_capacity_bytes() -> int:
    """Per-core VMEM capacity; conservative (v7x) fallback if unavailable."""
    try:
        return int(pltpu.get_tpu_info().vmem_capacity_bytes)
    except Exception:
        return 64 << 20


def _pick_lane(n: int) -> int:
    """Largest multiple of 128 that divides n (capped at _MAX_LANE); 0 if none."""
    start = (min(n, _MAX_LANE) // 128) * 128
    for lane in range(start, 0, -128):
        if n % lane == 0:
            return lane
    return 0


def _pick_rows(r_total: int, target_rows: int, align: int) -> int:
    """Rows per block: dtype-sublane-aligned, preferring an exact divisor of r_total."""
    if target_rows >= r_total:
        return r_total                               # full extent -> always legal
    best = max(align, (target_rows // align) * align)
    r = best
    while r >= align:
        if r_total % r == 0:
            return r                                 # divisor: no ragged last tile
        r -= align
    # No aligned divisor: accept a ragged (masked) last tile; still correct.
    return min(best, r_total)


def position_encoder_forward(
    x: jnp.ndarray,
    position_enc: jnp.ndarray,
    *,
    min_pallas_bytes: int = _MIN_PALLAS_BYTES,
    donate_x: bool = False,
) -> jnp.ndarray:
    """x: [B, S, D]; position_enc: [1, S, D] -> [B, S, D] in x.dtype."""
    B, S, D = x.shape
    assert position_enc.shape == (1, S, D)

    # Prefer a pre-cast table (PositionEncoder caches these); cast only if needed.
    pe = position_enc if position_enc.dtype == x.dtype else position_enc.astype(x.dtype)

    itemsize = jnp.dtype(x.dtype).itemsize
    total_bytes = B * S * D * itemsize
    N = S * D
    lane = _pick_lane(N)

    # Small-tensor gate / no lane-dense factorization -> plain XLA multiply.
    if lane == 0 or total_bytes < min_pallas_bytes:
        return x * pe

    R = N // lane
    # Sublane alignment by dtype: 8 rows (f32), 16 (bf16/f16), 32 (int8/fp8).
    align = max(8, 32 // itemsize)

    capacity = _vmem_capacity_bytes()
    # Keep 8x block (2 inputs + 1 output, double-buffered, + headroom) well
    # inside the chip's VMEM; capacity//16 caps blocks on small-VMEM parts.
    target_block_bytes = min(_TARGET_BLOCK_BYTES, capacity // 16)
    target_rows = max(1, target_block_bytes // (lane * itemsize))
    rows_per_block = _pick_rows(R, target_rows, align)
    grid_rows = pl.cdiv(R, rows_per_block)

    # Megacore: make sure there are >= 2 grid steps so both TCs get work.
    if grid_rows * B < 2 and R >= 2 * align:
        rows_per_block = _pick_rows(R, max(align, R // 2), align)
        grid_rows = pl.cdiv(R, rows_per_block)

    # Contiguous (free) reshapes to the lane-dense view.
    x3 = x.reshape(B, R, lane)
    pe3 = pe.reshape(1, R, lane)

    block = (1, rows_per_block, lane)
    block_bytes = rows_per_block * lane * itemsize
    # Generation-aware scoped-VMEM limit: floor 32 MiB (v5e default is 16 MiB),
    # ceiling 75% of physical capacity (leaves compiler-internal scratch room,
    # important on v7x's 64 MiB per-TC VMEM).
    vmem_limit = int(min(int(capacity * 0.75), max(32 << 20, 8 * block_bytes)))

    out3 = pl.pallas_call(
        _pe_mul_kernel,
        out_shape=jax.ShapeDtypeStruct((B, R, lane), x.dtype),
        grid_spec=pltpu.PrefetchScalarGridSpec(
            num_scalar_prefetch=0,
            # Row tiles outer, batch inner: the PE block index is constant
            # across the inner batch loop, so it is not re-DMA'd per batch.
            grid=(grid_rows, B),
            in_specs=[
                pl.BlockSpec(block, lambda t, b: (b, t, 0)),   # x
                pl.BlockSpec(block, lambda t, b: (0, t, 0)),   # PE (broadcast over B)
            ],
            out_specs=pl.BlockSpec(block, lambda t, b: (b, t, 0)),
        ),
        compiler_params=pltpu.CompilerParams(
            dimension_semantics=("parallel", "parallel"),
            vmem_limit_bytes=vmem_limit,
        ),
        input_output_aliases=({0: 0} if donate_x else {}),
    )(x3, pe3)

    return out3.reshape(B, S, D)


# ---------------------------------------------------------------------------
# Module-like wrapper: builds the table once, caches per-dtype casts.
# ---------------------------------------------------------------------------
class PositionEncoder:
    """JAX/Pallas equivalent of the PyTorch PositionEncoder module."""

    def __init__(self, d_model: int, seq_len: int = 4):
        self.position_enc = make_position_enc(d_model, seq_len)   # (1, S, D) fp32
        self._cast_cache = {}

    def _table_for(self, dtype) -> jnp.ndarray:
        key = jnp.dtype(dtype).name
        tbl = self._cast_cache.get(key)
        if tbl is None:
            tbl = self.position_enc.astype(dtype)
            self._cast_cache[key] = tbl
        return tbl

    def __call__(self, x, *, min_pallas_bytes: int = _MIN_PALLAS_BYTES,
                 donate_x: bool = False):
        return position_encoder_forward(
            x, self._table_for(x.dtype),
            min_pallas_bytes=min_pallas_bytes, donate_x=donate_x)


# ---------------------------------------------------------------------------
# Demo / correctness check.
# ---------------------------------------------------------------------------
if __name__ == "__main__":
    key = jax.random.PRNGKey(0)
    k1, k2, k3 = jax.random.split(key, 3)

    # 1) Module-default seq_len=4, fp32; force the Pallas path (tiny tensor).
    B, S, D = 2, 4, 32
    enc = PositionEncoder(d_model=D, seq_len=S)
    x = jax.random.normal(k1, (B, S, D), dtype=jnp.float32)
    out = jax.block_until_ready(enc(x, min_pallas_bytes=0))
    ref = x * enc.position_enc
    np.testing.assert_allclose(np.asarray(out), np.asarray(ref), rtol=1e-6, atol=1e-6)

    # 2) Different (S, D) to exercise lane/row selection; still small; Pallas path.
    B2, S2, D2 = 2, 8, 64
    enc2 = PositionEncoder(d_model=D2, seq_len=S2)
    x2 = jax.random.normal(k2, (B2, S2, D2), dtype=jnp.float32)
    out2 = jax.block_until_ready(enc2(x2, min_pallas_bytes=0))
    ref2 = x2 * enc2.position_enc
    np.testing.assert_allclose(np.asarray(out2), np.asarray(ref2), rtol=1e-6, atol=1e-6)

    # 3) bf16 activations: exercises dtype-aware alignment + cached cast table.
    x3 = jax.random.normal(k3, (B2, S2, D2), dtype=jnp.float32).astype(jnp.bfloat16)
    out3 = jax.block_until_ready(enc2(x3, min_pallas_bytes=0))
    ref3 = x3 * enc2.position_enc.astype(jnp.bfloat16)
    np.testing.assert_allclose(np.asarray(out3, dtype=np.float32),
                               np.asarray(ref3, dtype=np.float32),
                               rtol=2e-2, atol=2e-2)

    # 4) Default small-tensor gate routes to the plain XLA path (sanity check).
    out4 = jax.block_until_ready(enc(x))
    np.testing.assert_allclose(np.asarray(out4), np.asarray(ref), rtol=1e-6, atol=1e-6)

    print("KERNEL_OK")
</pallas_src>

<mosaic_0001>
module attributes {stable_mosaic.version = 11 : i64} {
  func.func @_pe_mul_kernel(%arg0: i32, %arg1: i32, %arg2: memref<1x1x128xf32, #tpu.memory_space<vmem>>, %arg3: memref<1x1x128xf32, #tpu.memory_space<vmem>>, %arg4: memref<1x1x128xf32, #tpu.memory_space<vmem>>) attributes {dimension_semantics = [#tpu.dimension_semantics<parallel>, #tpu.dimension_semantics<parallel>], iteration_bounds = array<i64: 1, 2>, scalar_prefetch = 0 : i64, scratch_operands = 0 : i64, tpu.core_type = #tpu.core_type<tc>, window_params = [{transform_indices = @transform_0, window_bounds = array<i64: 1, 1, 128>}, {transform_indices = @transform_1, window_bounds = array<i64: 1, 1, 128>}, {transform_indices = @transform_2, window_bounds = array<i64: 1, 1, 128>}]} {
    %c0 = arith.constant 0 : index
    %c0_0 = arith.constant 0 : index
    %c0_1 = arith.constant 0 : index
    %0 = vector.load %arg2[%c0, %c0_0, %c0_1] : memref<1x1x128xf32, #tpu.memory_space<vmem>>, vector<1x1x128xf32>
    %c0_2 = arith.constant 0 : index
    %c0_3 = arith.constant 0 : index
    %c0_4 = arith.constant 0 : index
    %1 = vector.load %arg3[%c0_2, %c0_3, %c0_4] : memref<1x1x128xf32, #tpu.memory_space<vmem>>, vector<1x1x128xf32>
    %2 = arith.mulf %0, %1 : vector<1x1x128xf32>
    %c0_5 = arith.constant 0 : index
    %c0_6 = arith.constant 0 : index
    %c0_7 = arith.constant 0 : index
    %3 = vector.load %arg4[%c0_5, %c0_6, %c0_7] : memref<1x1x128xf32, #tpu.memory_space<vmem>>, vector<1x1x128xf32>
    tpu.vector_store %arg4[%c0_5, %c0_6, %c0_7], %2 {strides = array<i32>} : memref<1x1x128xf32, #tpu.memory_space<vmem>>, vector<1x1x128xf32>,
    return
  }
  func.func @transform_0(%arg0: i32, %arg1: i32) -> (i32, i32, i32) {
    %c0_i32 = arith.constant 0 : i32
    %c0_i32_0 = arith.constant 0 : i32
    return %arg1, %arg0, %c0_i32 : i32, i32, i32
  }
  func.func @transform_1(%arg0: i32, %arg1: i32) -> (i32, i32, i32) {
    %c0_i32 = arith.constant 0 : i32
    %c0_i32_0 = arith.constant 0 : i32
    %c0_i32_1 = arith.constant 0 : i32
    return %c0_i32, %arg0, %c0_i32_0 : i32, i32, i32
  }
  func.func @transform_2(%arg0: i32, %arg1: i32) -> (i32, i32, i32) {
    %c0_i32 = arith.constant 0 : i32
    %c0_i32_0 = arith.constant 0 : i32
    return %arg1, %arg0, %c0_i32 : i32, i32, i32
  }
}

</mosaic_0001>

<bundles_post_ra>
// kernel: tpu_custom_call.1
= control target key start
LH: loop header
LB: loop body
LE: loop exit
PB: predicated region body
PF: predicated region fallthrough
CT: control target
= control target key end

     0   :  { %7 = vsyncpa [#allocation3], 0  ;;  %s668_s0 = inlined_call_operand.hbm [shape: f32[2,1,128], index: 0, kind: input, shape index: {}]   ;;  %s669_s1 = inlined_call_operand.vmem [shape: f32[1,1,128], index: 1, kind: input, shape index: {}]   ;;  %s670_s2 = inlined_call_operand.hbm [shape: f32[2,1,128], index: 2, kind: output, shape index: {}]  }
   0x1   :  { %9 = vsyncpa [#allocation3 + $0x1], 0 }
   0x2   :  { %10 = vsyncpa [#allocation4], 0 }
   0x3   :  { %12 = vsyncpa [#allocation4 + $0x1], 0  ;;  %s492_s9 = smov 0   ;;  %s494_s10 = smov 0  }
   0x4   :  { %s496_s11 = smov 0   ;;  %s498_s12 = smov 0  }
   0x5   :  { %s500_s13 = smov 0   ;;  %s502_s14 = smov 0  }
   0x6 LB: > { %s289_s15 = sadd.s32 4294967295, %s473_s14   ;;  %s290_s16 = sadd.s32 4294967294, %s473_s14   ;;  %s473_s14 = sphi %s502_s14, %s18_s14   ;;  %s469_s13 = sphi %s500_s13, %s686_s13   ;;  %s465_s12 = sphi %s498_s12, %s685_s12   ;;  %s461_s11 = sphi %s496_s11, %s684_s11   ;;  %s457_s10 = sphi %s494_s10, %s683_s10   ;;  %s453_s9 = sphi %s492_s9, %s682_s9  }
   0x7   : > { %s27_s17 = sadd.s32 1, %s469_s13  ;;  %s39_s18 = sadd.s32 1, %s461_s11 }
   0x8   : > { %p28_p0 = scmp.ge.s32.totalorder %s27_s17, 2  ;;  %p46_p1 = scmp.ne.s32.totalorder %s461_s11, %s457_s10 }
   0x9   : > { %p47_p2 = scmp.eq.s32.totalorder %s473_s14, 0  ;;  %p52_p3 = scmp.ne.s32.totalorder %s457_s10, %s453_s9 }
   0xa   : > { %s688_s17 = smov (%p28_p0, %s27_s17), 0  ;;  %p53_p5 = scmp.eq.s32.totalorder %s289_s15, 0 }
   0xb   : > { %p533_p4 = por %p47_p2, %p46_p1  ;;  %s34_s20 = ssub.s32 %s469_s13, %s688_s17 }
   0xc   : > { %p104_p6 = scmp.eq.s32.totalorder %s289_s15, 1  ;;  %p37_p7 = scmp.eq.s32.totalorder %s34_s20, 0 }
   0xd   : > { %p539_p8 = por %p53_p5, %p52_p3  ;;  %p110_p10 = scmp.eq.s32.totalorder %s290_s16, 1 }
   0xe   : > { %p543_p9 = por %p104_p6, %p46_p1  ;;  %p311_p13 = scmp.lt.s32.totalorder %s473_s14, 2 }
   0xf   : > { %s548_s23 = scalar_select %p37_p7, %s461_s11, %s39_s18  }
  0x10   : > { %s674_s22 = scalar_select %p543_p9, 1, 0 }
  0x11   : > { %p550_p11 = por %p110_p10, %p52_p3  ;;  %s136_s25 = sand.u32 1, %s461_s11  }
  0x12   : > { %s294_s26 = sshll.u32 %s469_s13, 4  ;;  %s139_s27 = scalar_lea.vmem [#allocation2], %s136_s25 }
  0x13   : > { %s675_s24 = scalar_select %p550_p11, 1, 0 }
  0x14   : > { %s147_s28 = sshll.u32 %s139_s27, 4  ;;  %s561_s3 = scalar_lea.hbm %s668_s0, %s294_s26  ;;  %s563_s28 = int_to_ptr.vmem [resolvable:$true] %s147_s28 }
  0x15   : > { %p567_p0 = pnand %p311_p13, %p533_p4  ;;  %s137_s5 = scalar_lea.sflag [#allocation3], %s136_s25 }
  0x16   : > { %s361_s6 = scalar_lea.hbm %s561_s3, 16  ;;  %s366_s15 = scalar_lea.hbm %s668_s0, 32 }
  0x17   : > { %p362_p3 = scmp.ne.s32.totalorder %s561_s3, %s361_s6  ;;  %p363_p5 = pneg %p567_p0 }
  0x18   : > { %p367_p4 = scmp.lt.u32.totalorder %s561_s3, %s668_s0  ;;  %p368_p10 = scmp.lt.u32.totalorder %s366_s15, %s361_s6 }
  0x19   : > { %p364_p6 = pnand %p363_p5, %p362_p3  ;;  %p370_p12 = scmp.lt.u32.totalorder %s361_s6, %s561_s3 }
  0x1a   : > { %p369_p13 = por %p368_p10, %p367_p4 }
  0x1b   : > { %p365_p7 = pneg %p364_p6 }
  0x1c   : > { %p371_p1 = por %p370_p12, %p369_p13 }
  0x1e   : > { %p372_p2 = pnand %p371_p1, %p365_p7 }
  0x20   : > { %375 = shalt.err (!%p372_p2)
}
  0x21   : > { %s376_s19 = scalar_lea.vmem %s563_s28, 16  ;;  %s475_s20 = smov [#allocation2]  }
  0x22   : > { %p377_p3 = scmp.ne.s32.totalorder %s563_s28, %s376_s19  ;;  %s381_s25 = sshll.u32 %s475_s20, 4  ;;  %s382_s25 = int_to_ptr.vmem [resolvable:$false] %s381_s25 }
  0x23   : > { %s383_s26 = scalar_lea.vmem %s382_s25, 32  ;;  %p384_p9 = scmp.lt.s32.totalorder %s563_s28, %s382_s25 }
  0x24   : > { %p379_p6 = pnand %p377_p3, %p363_p5  ;;  %p385_p4 = scmp.lt.s32.totalorder %s383_s26, %s376_s19 }
  0x26   : > { %p380_p11 = pneg %p379_p6  ;;  %p386_p10 = por %p385_p4, %p384_p9 }
  0x28   : > { %p387_p12 = pnand %p386_p10, %p380_p11 }
  0x2a   : > { %390 = shalt.err (!%p387_p12)
}
  0x2b   : > { %306 = dma.hbm_to_vmem [thread:$0]  (!%p567_p0), %s561_s3, 16, %s563_s28, %s137_s5  }
  0x2c   : > { %p677_p1 = scmp.lt.s32.totalorder %s473_s14, 3  ;;  %p678_p2 = scmp.ge.s32.totalorder %s473_s14, 1 }
  0x2e   : > { %p153_p5 = pnand %p678_p2, %p677_p1 }
  0x2f   : > { %s603_s27 = sand.u32 (!%p153_p5), 1, %s457_s10  }
  0x30   : > { %156 = sbr.rel (%p153_p5) target bundleno = 82 (0x52), region = 28  ;;  %s159_s29 = scalar_lea.sflag (!%p153_p5), [#allocation3], %s603_s27 }
  0x31   : > { %s161_s30 = scalar_lea.vmem (!%p153_p5), [#allocation2], %s603_s27 }
  0x37   : > { %444 = dma.done.wait (%p539_p8), %s159_s29, 16  }
  0x38   : > { %446 = vsyncadd (%p539_p8), %s159_s29, 4294967280  ;;  %s182_s28 = scalar_lea.vmem [#allocation5], %s603_s27  ;;  %s296_s4 = sshll.u32 %s465_s12, 4  ;;  %v186_v0 = vld [vmem:[%s161_s30] sm:$0x1] }
  0x39   : > { %s204_s3 = sshll.u32 %s182_s28, 4  ;;  %v187_v1 = vld [vmem:[%s669_s1] sm:$0x1]  ;;  %s621_s21 = scalar_lea.hbm %s670_s2, %s296_s4  ;;  %s616_s3 = int_to_ptr.vmem [resolvable:$true] %s204_s3 }
  0x3a   : > { %v188_v2 = vmul.f32 %v187_v1, %v186_v0  ;;  %s191_s15 = scalar_lea.sflag [#allocation4], %s603_s27  ;;  %s391_s16 = scalar_lea.vmem %s616_s3, 16 }
  0x3b   : > { %p392_p8 = scmp.ne.s32.totalorder %s616_s3, %s391_s16  ;;  %p679_p9 = scmp.ne.s32.totalorder %s674_s22, 0 }
  0x3c   : > { %189 = vst [vmem:[%s182_s28] sm:$0x1] %v188_v2  ;;  %s476_s12 = smov [#allocation5]  }
  0x3d   : > { %p393_p11 = pnand %p392_p8, %p679_p9  ;;  %s395_s18 = sshll.u32 %s476_s12, 4  ;;  %s396_s18 = int_to_ptr.vmem [resolvable:$false] %s395_s18 }
  0x3e   : > { %s397_s19 = scalar_lea.vmem %s396_s18, 32  ;;  %p398_p7 = scmp.lt.s32.totalorder %s616_s3, %s396_s18 }
  0x3f   : > { %p394_p0 = pneg %p393_p11  ;;  %p399_p13 = scmp.lt.s32.totalorder %s397_s19, %s391_s16 }
  0x41   : > { %p400_p3 = por %p399_p13, %p398_p7 }
  0x43   : > { %p401_p6 = pnand %p400_p3, %p394_p0 }
  0x45   : > { %404 = shalt.err (!%p401_p6)
}
  0x46   : > { %s405_s20 = scalar_lea.hbm %s621_s21, 16  ;;  %s409_s27 = scalar_lea.hbm %s670_s2, 32 }
  0x47   : > { %p406_p4 = scmp.ne.s32.totalorder %s621_s21, %s405_s20  ;;  %p410_p1 = scmp.lt.u32.totalorder %s621_s21, %s670_s2 }
  0x48   : > { %p411_p2 = scmp.lt.u32.totalorder %s409_s27, %s405_s20  ;;  %p413_p8 = scmp.lt.u32.totalorder %s405_s20, %s621_s21 }
  0x49   : > { %p407_p10 = pnand %p406_p4, %p679_p9 }
  0x4a   : > { %p412_p5 = por %p411_p2, %p410_p1 }
  0x4b   : > { %p408_p12 = pneg %p407_p10 }
  0x4c   : > { %p414_p11 = por %p413_p8, %p412_p5 }
  0x4e   : > { %p415_p0 = pnand %p414_p11, %p408_p12 }
  0x50   : > { %418 = shalt.err (!%p415_p0)
}
  0x51   : > { %301 = dma.vmem_to_hbm [thread:$0]  (%p679_p9), %s616_s3, 16, %s621_s21, %s191_s15  }
  0x52 PF: > { %s216_s28 = sand.u32 1, %s453_s9   ;;  %p680_p7 = scmp.ne.s32.totalorder %s675_s24, 0 }
  0x53   : > { %p681_p13 = scmp.ge.s32.totalorder %s473_s14, 2  ;;  %s217_s4 = scalar_lea.sflag [#allocation4], %s216_s28 }
  0x55   : > { %p308_p3 = pnand %p681_p13, %p680_p7 }
  0x57   : > { %448 = dma.done.wait (!%p308_p3), %s217_s4, 16  }
  0x58   : > { %450 = vsyncadd (!%p308_p3), %s217_s4, 4294967280  ;;  %s18_s14 = sadd.s32 1, %s473_s14   ;;  %s682_s9 = smov %s457_s10 }
  0x59   : > { %p15_p6 = scmp.ge.s32.totalorder %s18_s14, 4   ;;  %s683_s10 = smov %s461_s11 }
  0x5a   : > { %s684_s11 = smov %s548_s23  ;;  %s685_s12 = smov %s469_s13 }
  0x5b   : > { %s686_s13 = smov %s688_s17  ;;  %17 = sbr.rel (!%p15_p6) target bundleno = 6 (0x6), region = 76 }
  0x62   :  { %221 = vsyncpa [#allocation3], 1 }
  0x63   :  { %223 = vsyncpa [#allocation3 + $0x1], 1 }
  0x64   :  { %224 = vsyncpa [#allocation4], 1 }
  0x65   :  { %226 = vsyncpa [#allocation4 + $0x1], 1 }

</bundles_post_ra>
